<compile_context>
chip_gen: v6e
topology: v6e:2x2x1
jax: 0.10.0
libtpu: 0.0.40
codegen_flags: <defaults>
</compile_context>

<pallas_src>
import functools  # noqa: F401  (kept for parity with typical kernel modules)

import jax
import jax.numpy as jnp
from jax.experimental import pallas as pl
from jax.experimental.pallas import tpu as pltpu


def _round_up(x, m):
    return (x + m - 1) // m * m


def _cdiv(a, b):
    return -(-a // b)


def _affine_gemm_kernel(x_ref, w_ref, b_ref, out_ref, acc_ref):
    """One (Bb, tk) x (tk, C_pad) MXU step of the folded affine network."""
    @pl.when(pl.program_id(1) == 0)
    def _init():
        acc_ref[...] = jnp.zeros_like(acc_ref)

    acc_ref[...] += jnp.dot(x_ref[...], w_ref[...],
                            preferred_element_type=jnp.float32)

    @pl.when(pl.program_id(1) == pl.num_programs(1) - 1)
    def _finalize():
        out_ref[...] = (acc_ref[...] + b_ref[...]).astype(out_ref.dtype)


def _fold_affine_weights(params, S):
    """Compose conv1 ∘ avg_pool((2,1)) ∘ conv2 ∘ mean ∘ linear into a single
    (S*E, C) matrix and (1, C) bias.  Exact in f32: the module is affine."""
    w1, b1 = params["w1"], params["b1"]          # [5, E, C1], [1, C1]
    w2, b2 = params["w2"], params["b2"]          # [3, C1, C2], [1, C2]
    wl, bl = params["wl"], params["bl"]          # [C2, C],    [1, C]
    E, C1 = w1.shape[1], w1.shape[2]
    C = wl.shape[1]
    L1 = S - 4
    L1p = L1 // 2
    L2 = L1p - 2
    assert L2 >= 1, "sequence too short for conv2 after pooling"

    hp = jax.lax.Precision.HIGHEST
    # conv2 ∘ mean ∘ linear as a map on pooled activations p[u, o1]:
    #   y[c] = sum_u sum_o1 p[u, o1] * M2[u, o1, c] + (b2 @ wl + bl)[c]
    g = jnp.einsum("jab,bc->jac", w2, wl, precision=hp)            # [3, C1, C]
    M2 = jnp.zeros((L1p, C1, C), jnp.float32)
    for j in range(3):                                             # u = v + j
        M2 = M2.at[j:j + L2].add(jnp.broadcast_to(g[j] / L2, (L2, C1, C)))
    # avg_pool2d((2,1)): p[u] = 0.5*(c1[2u] + c1[2u+1]); odd tail row dropped.
    M1 = jnp.zeros((L1, C1, C), jnp.float32)
    M1 = M1.at[:2 * L1p].set(0.5 * jnp.repeat(M2, 2, axis=0))
    # conv1: c1[t] = sum_k x[t+k] @ w1[k] + b1   (so s = t + k)
    W = jnp.zeros((S, E, C), jnp.float32)
    for k in range(5):
        W = W.at[k:k + L1].add(
            jnp.einsum("ea,tac->tec", w1[k], M1, precision=hp))
    b_fold = (jnp.einsum("a,tac->c", b1[0], M1, precision=hp)[None, :]
              + jnp.dot(b2, wl, precision=hp) + bl)                # [1, C]
    return W.reshape(S * E, C), b_fold


def cnn_model_forward(token_ids, params, *, block_batch=128, block_k=512,
                      matmul_dtype=jnp.bfloat16,
                      vmem_budget_bytes=28 * 1024 * 1024):
    """token_ids: int32 [seq, batch] (PyTorch/torchtext layout)."""
    emb_table = params["embedding"]
    S, B = token_ids.shape
    E = emb_table.shape[1]
    C = params["wl"].shape[1]

    # ---- wrapper-side exact affine fold (weights + all biases/scales) ------
    W_fold, b_fold = _fold_affine_weights(params, S)               # [S*E,C],[1,C]

    # ---- lane/sublane-aligned padding of the folded weight -----------------
    K = S * E
    C_pad = _round_up(C, 128)
    tk = min(_round_up(block_k, 128), _round_up(K, 128))
    K_pad = _round_up(K, tk)
    W_eff = jnp.zeros((K_pad, C_pad), jnp.float32).at[:K, :C].set(W_fold)
    W_eff = W_eff.astype(matmul_dtype)
    b_eff = jnp.zeros((1, C_pad), jnp.float32).at[:, :C].set(b_fold)

    # ---- embedding gather: bf16 table before the gather (half the HBM
    #      traffic), token ids transposed first so no [B,S,E] transpose -------
    # TODO(synk): fuse the gather in-kernel (scalar-prefetch token ids into
    # SMEM + memory_space=pl.ANY embedding table + per-row DMA) to remove the
    # remaining [B,S,E] HBM write+read entirely.
    x = emb_table.astype(matmul_dtype)[token_ids.T]                # [B, S, E]
    x = x.reshape(B, K)                                            # row-major: free

    # ---- batch blocking ------------------------------------------------------
    Bb = min(_round_up(block_batch, 8), _round_up(B, 8))
    if B > 8 and _cdiv(B, Bb) < 2:       # >=2 batch steps: keep both v7x TCs busy
        Bb = _round_up(_cdiv(B, 2), 8)
    # Cap Bb so the double-buffered working set fits a conservative VMEM budget
    # (valid on v5e/v6e/v7x; re-derive nothing per generation at runtime).
    bytes_per_row = 4 * tk + 12 * C_pad          # 2x bf16 x-buf + f32 acc + 2x f32 out
    fixed_bytes = 4 * tk * C_pad + 16 * C_pad    # 2x bf16 W-buf + 2x f32 bias
    bb_cap = max(8, ((vmem_budget_bytes - fixed_bytes) // bytes_per_row) // 8 * 8)
    Bb = max(8, min(Bb, bb_cap))
    B_pad = _round_up(B, Bb)
    x = jnp.pad(x, ((0, B_pad - B), (0, K_pad - K)))

    est_vmem = fixed_bytes + bytes_per_row * Bb
    vmem_limit = int(min(64 * 2**20,
                         max(3 * est_vmem // 2 + (2 << 20), 16 * 2**20)))

    n_b = B_pad // Bb
    n_k = K_pad // tk
    cost = pl.CostEstimate(
        flops=2 * B_pad * K_pad * C_pad,
        transcendentals=0,
        bytes_accessed=int(B_pad * K_pad * 2            # activations (bf16)
                           + n_b * K_pad * C_pad * 2    # folded weight re-reads
                           + B_pad * C_pad * 4),        # logits (f32)
    )

    out = pl.pallas_call(
        _affine_gemm_kernel,
        out_shape=jax.ShapeDtypeStruct((B_pad, C_pad), jnp.float32),
        grid_spec=pltpu.PrefetchScalarGridSpec(
            num_scalar_prefetch=0,
            grid=(n_b, n_k),
            in_specs=[
                pl.BlockSpec((Bb, tk), lambda b, k: (b, k)),        # x
                pl.BlockSpec((tk, C_pad), lambda b, k: (k, 0)),     # W_eff
                pl.BlockSpec((1, C_pad), lambda b, k: (0, 0)),      # b_eff
            ],
            out_specs=pl.BlockSpec((Bb, C_pad), lambda b, k: (b, 0)),
            scratch_shapes=[pltpu.VMEM((Bb, C_pad), jnp.float32)],
        ),
        compiler_params=pltpu.CompilerParams(
            dimension_semantics=("parallel", "arbitrary"),
            vmem_limit_bytes=vmem_limit),
        cost_estimate=cost,
    )(x, W_eff, b_eff)

    # PyTorch ends with .squeeze(); no-op for B>1 and C>1 (kept 2-D here).
    return out[:B, :C]


def _reference_forward(token_ids, params):
    """Pure-JAX f32 reference mirroring the PyTorch forward step by step."""
    emb_table, w1, b1, w2, b2, wl, bl = (
        params["embedding"], params["w1"], params["b1"],
        params["w2"], params["b2"], params["wl"], params["bl"])
    hp = jax.lax.Precision.HIGHEST
    x = jnp.transpose(emb_table[token_ids], (1, 0, 2))             # [B, S, E]
    B, S, _ = x.shape
    L1 = S - 4
    c1 = sum(jnp.einsum("ble,eo->blo", x[:, k:k + L1, :], w1[k], precision=hp)
             for k in range(5)) + b1                               # [B, L1, 70]
    L1p = L1 // 2
    p = c1[:, :2 * L1p, :].reshape(B, L1p, 2, -1).mean(axis=2)     # avg_pool (2,1)
    L2 = L1p - 2
    c2 = sum(jnp.einsum("blc,co->blo", p[:, k:k + L2, :], w2[k], precision=hp)
             for k in range(3)) + b2                               # [B, L2, 100]
    feat = c2.mean(axis=1)                                         # [B, 100]
    return jnp.dot(feat, wl, precision=hp) + bl                    # [B, C]


def init_params(key, vocab_size, embedding_size, class_size):
    ks = jax.random.split(key, 7)
    scale = 0.1
    return {
        # nn.Embedding(vocab, E)
        "embedding": jax.random.normal(ks[0], (vocab_size, embedding_size),
                                       jnp.float32),
        # Conv1d(1, 70, (5, E)) weight [70,1,5,E] -> stored as [5, E, 70]
        "w1": scale * jax.random.normal(ks[1], (5, embedding_size, 70),
                                        jnp.float32),
        "b1": scale * jax.random.normal(ks[2], (1, 70), jnp.float32),
        # Conv1d(70, 100, (3,1)) weight [100,70,3,1] -> stored as [3, 70, 100]
        "w2": scale * jax.random.normal(ks[3], (3, 70, 100), jnp.float32),
        "b2": scale * jax.random.normal(ks[4], (1, 100), jnp.float32),
        # Linear(100, classSize) -> stored transposed [100, C]
        "wl": scale * jax.random.normal(ks[5], (100, class_size), jnp.float32),
        "bl": scale * jax.random.normal(ks[6], (1, class_size), jnp.float32),
    }


if __name__ == "__main__":
    vocab_size, embedding_size, class_size, pad_index = 50, 32, 4, 1
    seq_len, batch = 16, 12            # batch padded to 16 inside the wrapper

    key = jax.random.PRNGKey(0)
    pkey, dkey = jax.random.split(key)
    params = init_params(pkey, vocab_size, embedding_size, class_size)

    # token ids, PyTorch layout [seq, batch]
    token_ids = jax.random.randint(dkey, (seq_len, batch), 0, vocab_size,
                                   dtype=jnp.int32)

    # block_batch=8 -> Bb=8, B_pad=16, 2 parallel batch steps;
    # block_k=256 on K=S*E=512 -> 2 reduction steps (exercises the accumulator).
    out = cnn_model_forward(token_ids, params, block_batch=8, block_k=256)
    out = jax.block_until_ready(out)

    ref = _reference_forward(token_ids, params)
    assert out.shape == (batch, class_size), out.shape
    max_err = float(jnp.max(jnp.abs(out - ref)))
    assert jnp.allclose(out, ref, atol=3e-2, rtol=3e-2), (max_err, out, ref)

    print("KERNEL_OK")
</pallas_src>

<mosaic_0001>
module attributes {stable_mosaic.version = 11 : i64} {
  func.func @_affine_gemm_kernel(%arg0: i32, %arg1: i32, %arg2: memref<8x256xbf16, #tpu.memory_space<vmem>>, %arg3: memref<256x128xbf16, #tpu.memory_space<vmem>>, %arg4: memref<1x128xf32, #tpu.memory_space<vmem>>, %arg5: memref<8x128xf32, #tpu.memory_space<vmem>>, %arg6: memref<8x128xf32, #tpu.memory_space<vmem>>) attributes {dimension_semantics = [#tpu.dimension_semantics<parallel>, #tpu.dimension_semantics<arbitrary>], iteration_bounds = array<i64: 2, 2>, scalar_prefetch = 0 : i64, scratch_operands = 1 : i64, tpu.core_type = #tpu.core_type<tc>, window_params = [{transform_indices = @transform_0, window_bounds = array<i64: 8, 256>}, {transform_indices = @transform_1, window_bounds = array<i64: 256, 128>}, {pipeline_mode = #tpu.pipeline_mode<synchronous>, transform_indices = @transform_2, window_bounds = array<i64: 1, 128>}, {transform_indices = @transform_3, window_bounds = array<i64: 8, 128>}]} {
    %c0_i32 = arith.constant 0 : i32
    %0 = arith.cmpi eq, %arg1, %c0_i32 : i32
    %1 = arith.extui %0 : i1 to i32
    %c0_i32_0 = arith.constant 0 : i32
    %2 = arith.cmpi ne, %1, %c0_i32_0 : i32
    scf.if %2 {
      %cst_9 = arith.constant 0.000000e+00 : f32
      %12 = vector.broadcast %cst_9 : f32 to vector<8x128xf32>
      %c0_10 = arith.constant 0 : index
      %c0_11 = arith.constant 0 : index
      %13 = vector.load %arg6[%c0_10, %c0_11] : memref<8x128xf32, #tpu.memory_space<vmem>>, vector<8x128xf32>
      tpu.vector_store %arg6[%c0_10, %c0_11], %12 {strides = array<i32>} : memref<8x128xf32, #tpu.memory_space<vmem>>, vector<8x128xf32>,
    } else {
    }
    %c0 = arith.constant 0 : index
    %c0_1 = arith.constant 0 : index
    %3 = vector.load %arg6[%c0, %c0_1] : memref<8x128xf32, #tpu.memory_space<vmem>>, vector<8x128xf32>
    %c0_2 = arith.constant 0 : index
    %c0_3 = arith.constant 0 : index
    %4 = vector.load %arg2[%c0_2, %c0_3] : memref<8x256xbf16, #tpu.memory_space<vmem>>, vector<8x256xbf16>
    %c0_4 = arith.constant 0 : index
    %c0_5 = arith.constant 0 : index
    %5 = vector.load %arg3[%c0_4, %c0_5] : memref<256x128xbf16, #tpu.memory_space<vmem>>, vector<256x128xbf16>
    %cst = arith.constant dense<0.000000e+00> : vector<8x128xf32>
    %6 = tpu.matmul %4, %5, %cst {dimension_numbers = #tpu.dot_dimension_numbers<[1], [0], [0], [1], [0, 0, 1, 1], [], []>} : vector<8x256xbf16>, vector<256x128xbf16>, vector<8x128xf32> -> vector<8x128xf32>
    %7 = arith.addf %3, %6 : vector<8x128xf32>
    %c0_6 = arith.constant 0 : index
    %c0_7 = arith.constant 0 : index
    %8 = vector.load %arg6[%c0_6, %c0_7] : memref<8x128xf32, #tpu.memory_space<vmem>>, vector<8x128xf32>
    tpu.vector_store %arg6[%c0_6, %c0_7], %7 {strides = array<i32>} : memref<8x128xf32, #tpu.memory_space<vmem>>, vector<8x128xf32>,
    %c1_i32 = arith.constant 1 : i32
    %9 = arith.cmpi eq, %arg1, %c1_i32 : i32
    %10 = arith.extui %9 : i1 to i32
    %c0_i32_8 = arith.constant 0 : i32
    %11 = arith.cmpi ne, %10, %c0_i32_8 : i32
    scf.if %11 {
      %c0_9 = arith.constant 0 : index
      %c0_10 = arith.constant 0 : index
      %12 = vector.load %arg6[%c0_9, %c0_10] : memref<8x128xf32, #tpu.memory_space<vmem>>, vector<8x128xf32>
      %c0_11 = arith.constant 0 : index
      %c0_12 = arith.constant 0 : index
      %13 = vector.load %arg4[%c0_11, %c0_12] : memref<1x128xf32, #tpu.memory_space<vmem>>, vector<1x128xf32>
      %14 = vector.broadcast %13 : vector<1x128xf32> to vector<8x128xf32>
      %15 = arith.addf %12, %14 : vector<8x128xf32>
      %c0_13 = arith.constant 0 : index
      %c0_14 = arith.constant 0 : index
      %16 = vector.load %arg5[%c0_13, %c0_14] : memref<8x128xf32, #tpu.memory_space<vmem>>, vector<8x128xf32>
      tpu.vector_store %arg5[%c0_13, %c0_14], %15 {strides = array<i32>} : memref<8x128xf32, #tpu.memory_space<vmem>>, vector<8x128xf32>,
    } else {
    }
    return
  }
  func.func @transform_0(%arg0: i32, %arg1: i32) -> (i32, i32) {
    %c0_i32 = arith.constant 0 : i32
    return %arg0, %arg1 : i32, i32
  }
  func.func @transform_1(%arg0: i32, %arg1: i32) -> (i32, i32) {
    %c0_i32 = arith.constant 0 : i32
    %c0_i32_0 = arith.constant 0 : i32
    return %arg1, %c0_i32 : i32, i32
  }
  func.func @transform_2(%arg0: i32, %arg1: i32) -> (i32, i32) {
    %c0_i32 = arith.constant 0 : i32
    %c0_i32_0 = arith.constant 0 : i32
    %c0_i32_1 = arith.constant 0 : i32
    return %c0_i32, %c0_i32_0 : i32, i32
  }
  func.func @transform_3(%arg0: i32, %arg1: i32) -> (i32, i32) {
    %c0_i32 = arith.constant 0 : i32
    %c0_i32_0 = arith.constant 0 : i32
    return %arg0, %c0_i32 : i32, i32
  }
}

</mosaic_0001>

<bundles_post_ra>
// kernel: tpu_custom_call.1
= control target key start
LH: loop header
LB: loop body
LE: loop exit
PB: predicated region body
PF: predicated region fallthrough
CT: control target
= control target key end

     0   :  { %8 = vsyncpa [#allocation4], 0  ;;  %s1323_s0 = inlined_call_operand.hbm [shape: bf16[16,512], index: 0, kind: input, shape index: {}]   ;;  %s1324_s1 = inlined_call_operand.hbm [shape: bf16[512,128], index: 1, kind: input, shape index: {}]   ;;  %s1325_s2 = inlined_call_operand.vmem [shape: f32[1,128], index: 2, kind: input, shape index: {}]   ;;  %s1326_s3 = inlined_call_operand.hbm [shape: f32[16,128], index: 3, kind: output, shape index: {}]  }
   0x1   :  { %10 = vsyncpa [#allocation4 + $0x1], 0 }
   0x2   :  { %11 = vsyncpa [#allocation7], 0 }
   0x3   :  { %13 = vsyncpa [#allocation7 + $0x1], 0 }
   0x4   :  { %14 = vsyncpa [#allocation5], 0 }
   0x5   :  { %16 = vsyncpa [#allocation5 + $0x1], 0  ;;  %s1012_s12 = smov 0   ;;  %s1014_s13 = smov 0  }
   0x6   :  { %s1016_s14 = smov 0   ;;  %s1018_s15 = smov 0  }
   0x7   :  { %s1020_s16 = smov 0   ;;  %s1022_s17 = smov 0  }
   0x8   :  { %s1024_s18 = smov 0   ;;  %s1026_s19 = smov 0  }
   0x9   :  { %s1028_s20 = smov 0   ;;  %s1030_s21 = smov 0  }
   0xa   :  { %s1032_s22 = smov 0   ;;  %s1034_s23 = smov 0  }
   0xb   :  { %s1036_s24 = smov 0   ;;  %s1038_s25 = smov 0  }
   0xc LB: > { %1336 = sst [smem:[#allocation12_spill]] %s932_s12  ;;  %s1327_s26 = sadd.s32 4294967295, %s984_s25   ;;  %s984_s25 = sphi %s1038_s25, %s22_s25   ;;  %s980_s24 = sphi %s1036_s24, %s1369_s24   ;;  %s976_s23 = sphi %s1034_s23, %s1380_s23   ;;  %s972_s22 = sphi %s1032_s22, %s1367_s22   ;;  %s968_s21 = sphi %s1030_s21, %s1379_s21   ;;  %s964_s20 = sphi %s1028_s20, %s1378_s20   ;;  %s960_s19 = sphi %s1026_s19, %s1377_s19   ;;  %s956_s18 = sphi %s1024_s18, %s1376_s18   ;;  %s952_s17 = sphi %s1022_s17, %s1375_s17   ;;  %s948_s16 = sphi %s1020_s16, %s1374_s16   ;;  %s944_s15 = sphi %s1018_s15, %s1373_s15   ;;  %s940_s14 = sphi %s1016_s14, %s1364_s14   ;;  %s936_s13 = sphi %s1014_s13, %s1372_s13   ;;  %s932_s12 = sphi %s1012_s12, %s1371_s12  }
   0xd   : > { %1337 = sst [smem:[#allocation13_spill]] %s940_s14  ;;  %s31_s28 = sadd.s32 1, %s976_s23 }
   0xe   : > { %1338 = sst [smem:[#allocation14_spill]] %s980_s24  ;;  %s34_s29 = sadd.s32 1, %s980_s24 }
   0xf   : > { %p32_p0 = scmp.ge.s32.totalorder %s31_s28, 2  ;;  %s43_s30 = sadd.s32 1, %s964_s20 }
  0x10   : > { %p50_p1 = scmp.ne.s32.totalorder %s964_s20, %s960_s19  ;;  %p51_p2 = scmp.eq.s32.totalorder %s984_s25, 0 }
  0x11   : > { %s1382_s28 = smov (%p32_p0, %s31_s28), 0  ;;  %s1384_s29 = smov (!%p32_p0, %s34_s29), %s980_s24 }
  0x12   : > { %1339 = sst [smem:[#allocation15_spill]] %s1382_s28  ;;  %s39_s4 = ssub.s32 %s976_s23, %s1382_s28 }
  0x13   : > { %p1095_p3 = por %p51_p2, %p50_p1  ;;  %p36_p4 = scmp.ge.s32.totalorder %s1384_s29, 2 }
  0x14   : > { %p56_p5 = scmp.ne.s32.totalorder %s960_s19, %s956_s18  ;;  %p1102_p6 = scmp.eq.s32.totalorder %s1327_s26, 0 }
  0x15   : > { %p67_p7 = scmp.eq.s32.totalorder %s39_s4, 0  ;;  %s1386_s29 = smov (%p36_p4, %s1384_s29), 0 }
  0x16   : > { %1342 = sst [smem:[#allocation16_spill]] %s1386_s29  ;;  %p1110_p8 = por %p1102_p6, %p56_p5 }
  0x17   : > { %s69_s8 = sadd.s32 1, %s952_s17  ;;  %s38_s9 = ssub.s32 %s980_s24, %s1386_s29 }
  0x18   : > { %p76_p9 = scmp.ne.s32.totalorder %s952_s17, %s948_s16  ;;  %s40_s10 = sor.u32 %s39_s4, %s38_s9 }
  0x19   : > { %p82_p10 = scmp.ne.s32.totalorder %s948_s16, %s944_s15  ;;  %p41_p11 = scmp.eq.s32.totalorder %s40_s10, 0 }
  0x1a   : > { %p1123_p12 = por %p76_p9, %p51_p2  ;;  %p114_p0 = scmp.eq.s32.totalorder %s38_s9, 0 }
  0x1b   : > { %s1128_s18 = scalar_select %p67_p7, %s952_s17, %s69_s8  }
  0x1c   : > { %s1131_s27 = scalar_select %p41_p11, %s964_s20, %s43_s30  }
  0x1d   : > { %1345 = sst [smem:[#allocation17_spill]] %s1128_s18  ;;  %p1135_p13 = por %p82_p10, %p1102_p6 }
  0x1e   : > { %1346 = sst [smem:[#allocation18_spill]] %s1131_s27  ;;  %s116_s15 = sadd.s32 1, %s940_s14 }
  0x1f   : > { %s1347_s26 = scalar_select %p1135_p13, 1, 0 }
  0x20   : > { %p126_p1 = scmp.ne.s32.totalorder %s940_s14, %s936_s13  ;;  %s1349_s10 = sadd.s32 4294967295, %s984_s25  }
  0x21   : > { %s1143_s4 = scalar_select %p114_p0, %s940_s14, %s116_s15  }
  0x22   : > { %p127_p2 = scmp.eq.s32.totalorder %s1349_s10, 3  ;;  %p132_p4 = scmp.ne.s32.totalorder %s936_s13, %s932_s12 }
  0x23   : > { %1348 = sst [smem:[#allocation19_spill]] %s1143_s4  ;;  %s1350_s8 = sadd.s32 4294967294, %s984_s25  }
  0x24   : > { %p133_p5 = scmp.eq.s32.totalorder %s1350_s8, 3  ;;  %p1151_p7 = por %p127_p2, %p126_p1 }
  0x25   : > { %p645_p6 = scmp.lt.s32.totalorder %s984_s25, 4  ;;  %s156_s9 = sand.u32 1, %s964_s20  }
  0x26   : > { %s1351_s30 = scalar_select %p1151_p7, 1, 0 }
  0x27   : > { %p1156_p9 = por %p133_p5, %p132_p4  ;;  %s569_s15 = sshll.u32 %s156_s9, 3 }
  0x28   : > { %s570_s29 = sshll.u32 %s976_s23, 1  ;;  %s571_s28 = sshll.u32 %s980_s24, 2 }
  0x29   : > { %s1352_s6 = scalar_select %p1156_p9, 1, 0 }
  0x2a   : > { %s160_s10 = scalar_lea.vmem [#allocation3], %s569_s15  ;;  %s166_s18 = sadd.s32 %s571_s28, %s570_s29 }
  0x2b   : > { %1353 = sst [smem:[#allocation20_spill]] %s1352_s6  ;;  %s170_s27 = sshll.u32 %s160_s10, 4  ;;  %s171_s27 = int_to_ptr.vmem [resolvable:$true] %s170_s27 }
  0x2c   : > { %s572_s4 = sshll.u32 %s166_s18, 6  ;;  %p1167_p10 = pnand %p645_p6, %p1095_p3 }
  0x2d   : > { %s168_s6 = scalar_lea.hbm %s1323_s0, %s572_s4  ;;  %p1178_p11 = pnand %p645_p6, %p1123_p12 }
  0x2e   : > { %p576_p0 = scmp.ge.s32.totalorder %s984_s25, 1  ;;  %s157_s28 = scalar_lea.sflag [#allocation4], %s156_s9 }
  0x2f   : > { %p782_p1 = pneg %p1167_p10  ;;  %s793_s29 = scalar_lea.vmem %s171_s27, 128 }
  0x30   : > { %p794_p3 = scmp.ne.s32.totalorder %s171_s27, %s793_s29  ;;  %s986_s5 = smov [#allocation3]  }
  0x31   : > { %s798_s18 = sshll.u32 %s986_s5, 4  ;;  %s799_s18 = int_to_ptr.vmem [resolvable:$false] %s798_s18 }
  0x32   : > { %p796_p2 = pnand %p794_p3, %p782_p1  ;;  %s800_s12 = scalar_lea.vmem %s799_s18, 256 }
  0x33   : > { %p801_p5 = scmp.lt.s32.totalorder %s171_s27, %s799_s18  ;;  %p802_p9 = scmp.lt.s32.totalorder %s800_s12, %s793_s29 }
  0x34   : > { %p797_p4 = pneg %p796_p2 }
  0x35   : > { %p803_p7 = por %p802_p9, %p801_p5 }
  0x37   : > { %p804_p13 = pnand %p803_p7, %p797_p4 }
  0x39   : > { %807 = shalt.err (!%p804_p13)
}
  0x3a   : > { %637 = dma.hbm_to_vmem [thread:$0]  (!%p1167_p10), %s168_s6, 128, %s171_s27, %s157_s28  }
  0x3b   : > { %p196_p12 = scmp.lt.s32.totalorder %s984_s25, 5  ;;  %s177_s14 = sand.u32 1, %s952_s17  }
  0x3c   : > { %s605_s11 = sshll.u32 %s976_s23, 11  ;;  %s573_s9 = sshll.u32 %s177_s14, 7 }
  0x3d   : > { %p1192_p6 = pnand %p576_p0, %p196_p12  ;;  %s187_s29 = scalar_lea.hbm %s1324_s1, %s605_s11 }
  0x3e   : > { %s181_s8 = scalar_lea.vmem [#allocation6], %s573_s9  ;;  %s178_s18 = scalar_lea.sflag [#allocation7], %s177_s14 }
  0x3f   : > { %s188_s5 = sshll.u32 %s181_s8, 4  ;;  %p810_p13 = pneg %p1178_p11  ;;  %s189_s5 = int_to_ptr.vmem [resolvable:$true] %s188_s5 }
  0x40   : > { %s821_s27 = scalar_lea.vmem %s189_s5, 2048  ;;  %s987_s6 = smov [#allocation6]  }
  0x41   : > { %p822_p7 = scmp.ne.s32.totalorder %s189_s5, %s821_s27  ;;  %s826_s28 = sshll.u32 %s987_s6, 4  ;;  %s827_s28 = int_to_ptr.vmem [resolvable:$false] %s826_s28 }
  0x42   : > { %s828_s12 = scalar_lea.vmem %s827_s28, 4096  ;;  %p829_p0 = scmp.lt.s32.totalorder %s189_s5, %s827_s28 }
  0x43   : > { %p824_p9 = pnand %p822_p7, %p810_p13  ;;  %p830_p1 = scmp.lt.s32.totalorder %s828_s12, %s821_s27 }
  0x45   : > { %p825_p10 = pneg %p824_p9  ;;  %p831_p3 = por %p830_p1, %p829_p0 }
  0x47   : > { %p832_p2 = pnand %p831_p3, %p825_p10 }
  0x49   : > { %835 = shalt.err (!%p832_p2)
}
  0x4a   : > { %s988_s11 = smov 64   ;;  %s989_s9 = smov 4  }
  0x4b   : > { %640 = dma.hbm_to_vmem [thread:$0]  (!%p1178_p11), %s187_s29, 2048, %s189_s5, %s178_s18, %s988_s11, %s988_s11, %s989_s9  }
  0x4c   : > { %200 = sbr.rel (%p1192_p6) target bundleno = 362 (0x16a), region = 32  ;;  %s202_s14 = sand.u32 (!%p1192_p6), 1, %s960_s19  }
  0x4d   : > { %s1206_s15 = sshll.u32 (!%p1192_p6), %s202_s14, 3  ;;  %s203_s10 = scalar_lea.sflag (!%p1192_p6), [#allocation4], %s202_s14 }
  0x4e   : > { %s206_s8 = scalar_lea.vmem (!%p1192_p6), [#allocation3], %s1206_s15 }
  0x51   : > { %919 = dma.done.wait (%p1110_p8), %s203_s10, 128  }
  0x52   : > { %921 = vsyncadd (%p1110_p8), %s203_s10, 4294967168  ;;  %s211_s24 = sand.u32 1, %s948_s16   ;;  %p1357_p11 = scmp.ne.s32.totalorder %s1347_s26, 0 }
  0x53   : > { %s578_s29 = sshll.u32 %s211_s24, 7  ;;  %s212_s5 = scalar_lea.sflag [#allocation7], %s211_s24 }
  0x54   : > { %s1214_s4 = scalar_lea.vmem [#allocation6], %s578_s29 }
  0x55   : > { %923 = dma.done.wait (%p1357_p11), %s212_s5, 2048  }
  0x56   : > { %925 = vsyncadd (%p1357_p11), %s212_s5, 4294965248  ;;  %s240_s18 = sand.u32 1, %s936_s13   ;;  %p580_p8 = scmp.ne.s32.totalorder %s968_s21, 0 }
  0x57   : > { %s1223_s27 = sshll.u32 %s240_s18, 3 }
  0x58   : > { %s242_s7 = scalar_lea.vmem [#allocation8], %s1223_s27  ;;  %249 = sbr.rel (%p580_p8) target bundleno = 95 (0x5f), region = 44 }
  0x5d   : > { %v990_v0 = vmov 0.0  }
  0x5e   : > { %250 = vst [vmem:[#allocation2] sm:$0xff] %v990_v0 }
  0x5f PF: > { %v762_v1 = vld [vmem:[%s1214_s4 + $0x78] sm:$0xff]   ;;  %v764_v3 = vld [vmem:[%s1214_s4 + $0x70] sm:$0xff]   ;;  %v766_v5 = vld [vmem:[%s1214_s4 + $0x68] sm:$0xff]   ;;  %p599_p4 = scmp.ne.s32.totalorder %s968_s21, 1 }
  0x60   : > { %v763_v2 = vld [vmem:[%s1214_s4 + $0x38] sm:$0xff]   ;;  %606 = vmatprep.subr.bf16.mxu0 %v762_v1  ;;  %v765_v4 = vld [vmem:[%s1214_s4 + $0x30] sm:$0xff]   ;;  %v767_v6 = vld [vmem:[%s1214_s4 + $0x28] sm:$0xff]  }
  0x61   : > { %607 = vmatpush3.bf16.msra.mxu0 %v763_v2  ;;  %v768_v7 = vld [vmem:[%s1214_s4 + $0x60] sm:$0xff]   ;;  %v770_v9 = vld [vmem:[%s1214_s4 + $0x58] sm:$0xff]   ;;  %v772_v11 = vld [vmem:[%s1214_s4 + $0x50] sm:$0xff]  }
  0x62   : > { %608 = vmatprep.subr.bf16.mxu0 %v764_v3  ;;  %v769_v8 = vld [vmem:[%s1214_s4 + $0x20] sm:$0xff]   ;;  %v771_v10 = vld [vmem:[%s1214_s4 + $0x18] sm:$0xff]   ;;  %v773_v14 = vld [vmem:[%s1214_s4 + $0x10] sm:$0xff]  }
  0x63   : > { %v252_v12 = vld [vmem:[%s206_s8] sm:$0xff]  ;;  %v774_v15 = vld [vmem:[%s1214_s4 + $0x48] sm:$0xff]   ;;  %v776_v17 = vld [vmem:[%s1214_s4 + $0x40] sm:$0xff]  }
  0x64   : > { %v582_v13 = vcombine.high %v252_v12, %v252_v12  ;;  %v775_v16 = vld [vmem:[%s1214_s4 + $0x8] sm:$0xff]   ;;  %v777_v18 = vld [vmem:[%s1214_s4] sm:$0xff]   ;;  %v581_v19 = vcombine.low %v252_v12, %v252_v12 }
  0x65   : > { %609 = vmatpush3.bf16.msra.mxu0 %v765_v4  ;;  %v251_v21 = vld [vmem:[#allocation2] sm:$0xff] }
  0x66   : > { %610 = vmatprep.subr.bf16.mxu0 %v766_v5  ;;  %420 = vmatprep.mubr.bf16.mxu0 %v582_v13 }
  0x69   : > { %611 = vmatpush3.bf16.msra.mxu0 %v767_v6 }
  0x6a   : > { %612 = vmatprep.subr.bf16.mxu0 %v768_v7 }
  0x6d   : > { %613 = vmatpush3.bf16.msra.mxu0 %v769_v8 }
  0x6e   : > { %614 = vmatprep.subr.bf16.mxu0 %v770_v9 }
  0x71   : > { %615 = vmatpush3.bf16.msra.mxu0 %v771_v10 }
  0x72   : > { %616 = vmatprep.subr.bf16.mxu0 %v772_v11 }
  0x75   : > { %617 = vmatpush3.bf16.msra.mxu0 %v773_v14 }
  0x76   : > { %618 = vmatprep.subr.bf16.mxu0 %v774_v15 }
  0x79   : > { %619 = vmatpush3.bf16.msra.mxu0 %v775_v16 }
  0x7a   : > { %620 = vmatprep.subr.bf16.mxu0 %v776_v17 }
  0x7d   : > { %621 = vmatpush3.bf16.msra.mxu0 %v777_v18 }
  0x80   : > { %421 = vmatmul.mubr.bf16.vlgmr.msra.gmra.mxu0 %v581_v19 }
 0x140   : > { %v622_v20 = vpop.f32.mrf.mxu0 }
 0x142   : > { %v623_v22 = vpop.f32.mrf.mxu0 }
 0x143   : > { %v624_v23 = vadd.f32 %v623_v22, %v622_v20  ;;  %433 = sbr.rel (%p599_p4) target bundleno = 338 (0x152), region = 48 }
 0x144   : > { %v625_v24 = vpop.f32.mrf.mxu0 }
 0x145   : > { %v428_v25 = vadd.f32 %v624_v23, %v251_v21 }
 0x146   : > { %v626_v26 = vpop.f32.mrf.mxu0 }
 0x147   : > { %429 = vst [vmem:[#allocation2] sm:$0xff] %v428_v25 }
 0x148   : > { %v600_v28 = vld [vmem:[%s1325_s2] ss:$0 sm:$0xff] }
 0x14e   : > { %v434_v27 = vld [vmem:[#allocation2] sm:$0xff] }
 0x14f   : > { %v442_v29 = vadd.f32 %v600_v28, %v434_v27 }
 0x151   : > { %443 = vst [vmem:[%s242_s7] sm:$0xff] %v442_v29 }
 0x152 PF: > { %s602_s28 = sshll.u32 %s972_s22, 7  ;;  %s458_s9 = sshll.u32 %s242_s7, 4  ;;  %s459_s9 = int_to_ptr.vmem [resolvable:$true] %s458_s9 }
 0x153   : > { %s456_s21 = scalar_lea.hbm %s1326_s3, %s602_s28  ;;  %s445_s14 = scalar_lea.sflag [#allocation5], %s240_s18 }
 0x154   : > { %s836_s15 = scalar_lea.vmem %s459_s9, 128  ;;  %p1358_p12 = scmp.ne.s32.totalorder %s1351_s30, 0 }
 0x155   : > { %p837_p5 = scmp.ne.s32.totalorder %s459_s9, %s836_s15  ;;  %s991_s10 = smov [#allocation8]  }
 0x156   : > { %s840_s8 = sshll.u32 %s991_s10, 4  ;;  %s841_s8 = int_to_ptr.vmem [resolvable:$false] %s840_s8 }
 0x157   : > { %p838_p6 = pnand %p837_p5, %p1358_p12  ;;  %s842_s24 = scalar_lea.vmem %s841_s8, 256 }
 0x158   : > { %p843_p7 = scmp.lt.s32.totalorder %s459_s9, %s841_s8  ;;  %p844_p9 = scmp.lt.s32.totalorder %s842_s24, %s836_s15 }
 0x159   : > { %p839_p13 = pneg %p838_p6 }
 0x15a   : > { %p845_p10 = por %p844_p9, %p843_p7 }
 0x15c   : > { %p846_p0 = pnand %p845_p10, %p839_p13 }
 0x15e   : > { %849 = shalt.err (!%p846_p0)
}
 0x15f   : > { %s850_s22 = scalar_lea.hbm %s456_s21, 128  ;;  %s854_s4 = scalar_lea.hbm %s1326_s3, 256 }
 0x160   : > { %p851_p1 = scmp.ne.s32.totalorder %s456_s21, %s850_s22  ;;  %p855_p11 = scmp.lt.s32.totalorder %s456_s21, %s1326_s3 }
 0x161   : > { %p856_p8 = scmp.lt.s32.totalorder %s854_s4, %s850_s22 }
 0x162   : > { %p852_p3 = pnand %p851_p1, %p1358_p12 }
 0x163   : > { %p857_p4 = por %p856_p8, %p855_p11 }
 0x164   : > { %p853_p2 = pneg %p852_p3 }
 0x166   : > { %p858_p5 = pnand %p857_p4, %p853_p2 }
 0x168   : > { %861 = shalt.err (!%p858_p5)
}
 0x169   : > { %632 = dma.vmem_to_hbm [thread:$0]  (%p1358_p12), %s459_s9, 128, %s456_s21, %s445_s14  }
 0x16a PF: > { %s1359_s7 = sld [smem:[#allocation12_spill]]  ;;  %p646_p6 = scmp.ge.s32.totalorder %s984_s25, 2 }
 0x16b   : > { %s1360_s26 = sld [smem:[#allocation20_spill]] }
 0x170   : > { %s470_s6 = sand.u32 1, %s1359_s7  }
 0x171   : > { %p1361_p13 = scmp.ne.s32.totalorder %s1360_s26, 0  ;;  %s471_s28 = scalar_lea.sflag [#allocation5], %s470_s6 }
 0x173   : > { %p642_p7 = pnand %p646_p6, %p1361_p13 }
 0x175   : > { %p643_p9 = pneg %p642_p7 }
 0x177   : > { %927 = dma.done.wait (%p643_p9), %s471_s28, 128  }
 0x178   : > { %929 = vsyncadd (%p643_p9), %s471_s28, 4294967168  ;;  %s22_s25 = sadd.s32 1, %s984_s25   ;;  %s1363_s30 = sld [smem:[#allocation13_spill]] }
 0x179   : > { %p1276_p10 = scmp.ge.s32.totalorder %s22_s25, 6   ;;  %s1364_s14 = sld [smem:[#allocation19_spill]] }
 0x17a   : > { %s1365_s11 = sld [smem:[#allocation17_spill]]  ;;  %s1371_s12 = smov %s936_s13 }
 0x17b   : > { %s1366_s21 = sld [smem:[#allocation18_spill]]  ;;  %s1373_s15 = smov %s948_s16 }
 0x17c   : > { %s1367_s22 = sld [smem:[#allocation14_spill]]  ;;  %s1374_s16 = smov %s952_s17 }
 0x17d   : > { %s1368_s9 = sld [smem:[#allocation15_spill]]  ;;  %s1376_s18 = smov %s960_s19 }
 0x17e   : > { %s1369_s24 = sld [smem:[#allocation16_spill]]  ;;  %s1372_s13 = smov %s1363_s30 }
 0x17f   : > { %s1377_s19 = smov %s964_s20  ;;  %21 = sbr.rel (!%p1276_p10) target bundleno = 12 (0xc), region = 98 }
 0x180   : > { %s1375_s17 = smov %s1365_s11 }
 0x181   : > { %s1378_s20 = smov %s1366_s21  ;;  %s1379_s21 = smov %s976_s23 }
 0x183   : > { %s1380_s23 = smov %s1368_s9 }
 0x184   :  { %476 = vsyncpa [#allocation4], 1 }
 0x185   :  { %478 = vsyncpa [#allocation4 + $0x1], 1 }
 0x186   :  { %479 = vsyncpa [#allocation7], 1 }
 0x187   :  { %481 = vsyncpa [#allocation7 + $0x1], 1 }
 0x188   :  { %482 = vsyncpa [#allocation5], 1 }
 0x189   :  { %484 = vsyncpa [#allocation5 + $0x1], 1 }

</bundles_post_ra>
